<compile_context>
chip_gen: v7x
topology: tpu7x:2x2x1
jax: 0.10.0
libtpu: 0.0.40
codegen_flags: <defaults>
</compile_context>

<pallas_src>
import functools

import jax
import jax.numpy as jnp
from jax.experimental import pallas as pl
from jax.experimental.pallas import tpu as pltpu

EPS = 1e-5
MAX_TILE_N = 4096   # point-tile size; safe on v5e/v6e/v7x with chunked layer 3
C_CHUNK = 256       # layer-3 output-channel chunk (1024 = 4 x 256)
FEAT = 1024


def _pointnet_feat_kernel(x_ref, w1_ref, b1_ref, w2_ref, b2_ref, w3_ref,
                          gmax_ref, *, c_chunk):
    """Per-point MLP + running global-max pool for one (batch, point-tile)."""
    t = pl.program_id(1)

    # First point tile of this batch: reset the running-max accumulator
    # (the output block is VMEM-resident across the carried point axis).
    @pl.when(t == 0)
    def _():
        gmax_ref[...] = jnp.full(gmax_ref.shape, -jnp.inf, gmax_ref.dtype)

    # --- layer 1: (tile_n, 3) @ (3, 64) done on the VPU in f32.
    # K=3 would waste an entire MXU pass; f32 keeps the raw xyz coords exact.
    x = x_ref[...]                                                # (tile_n, 3) f32
    h = (x[:, 0:1] * w1_ref[0:1, :]
         + x[:, 1:2] * w1_ref[1:2, :]
         + x[:, 2:3] * w1_ref[2:3, :]) + b1_ref[...]
    h = jnp.maximum(h, 0.0)                                       # (tile_n, 64) f32

    # --- layer 2: MXU matmul, bf16 operands, f32 accumulation.
    h = jnp.dot(h.astype(jnp.bfloat16), w2_ref[...],
                preferred_element_type=jnp.float32) + b2_ref[...]
    h = jnp.maximum(h, 0.0).astype(jnp.bfloat16)                  # (tile_n, 128) bf16

    # --- layer 3, chunked over output channels: each (tile_n, c_chunk) slab is
    # reduced (max over points) immediately into its lane slice of the output,
    # so the full (tile_n, 1024) f32 activation never exists.  b3 is deferred
    # to the head outside the kernel (per-channel constant commutes with max).
    n_chunks = FEAT // c_chunk
    for c in range(n_chunks):
        sl = slice(c * c_chunk, (c + 1) * c_chunk)
        h3 = jnp.dot(h, w3_ref[:, sl], preferred_element_type=jnp.float32)
        gmax_ref[:, sl] = jnp.maximum(gmax_ref[:, sl],
                                      jnp.max(h3, axis=0, keepdims=True))


def _fold_bn(w, b, gamma, beta, mean, var):
    """Fold eval-mode BatchNorm1d into the preceding linear layer."""
    scale = gamma / jnp.sqrt(var + EPS)          # (Cout,)
    return w * scale[None, :], (b - mean) * scale + beta


def init_params(key):
    """Deterministic synthetic parameters matching the PyTorch module shapes.

    w1 stays f32 (layer 1 runs on the VPU in f32); the remaining weights are
    bf16 (MXU-native); biases are f32, shaped (1, Cout).
    """
    dims = [(3, 64), (64, 128), (128, 1024), (1024, 512), (512, 256), (256, 4)]
    keys = jax.random.split(key, 2 * len(dims))
    params = []
    for i, (cin, cout) in enumerate(dims):
        w = (jax.random.normal(keys[2 * i], (cin, cout), jnp.float32)
             / jnp.sqrt(jnp.float32(cin)))
        b = 0.01 * jax.random.normal(keys[2 * i + 1], (cout,), jnp.float32)
        if i < 5:  # layers followed by a BatchNorm1d (eval-mode fold)
            gamma = jnp.ones((cout,), jnp.float32)
            beta = jnp.zeros((cout,), jnp.float32)
            mean = jnp.zeros((cout,), jnp.float32)
            var = jnp.ones((cout,), jnp.float32)
            w, b = _fold_bn(w, b, gamma, beta, mean, var)
        w_dtype = jnp.float32 if i == 0 else jnp.bfloat16
        params += [w.astype(w_dtype), b[None, :].astype(jnp.float32)]
    return params


def pointnet_forward(x, params, *, max_tile_n=MAX_TILE_N):
    """x: (B, 3, N) float32, PyTorch NCL layout. Returns (B, 4) float32 logits."""
    w1, b1, w2, b2, w3, b3, w4, b4, w5, b5, w6, b6 = params
    B, C, N = x.shape
    assert C == 3

    # layout: NCL -> (B, N, 3) points-major, kept in f32 (layer 1 is f32 VPU).
    x_pts = jnp.transpose(x, (0, 2, 1)).astype(jnp.float32)

    if N <= max_tile_n:
        tile_n, n_padded = N, N
    else:
        tile_n = max_tile_n
        n_padded = -(-N // tile_n) * tile_n
        if n_padded != N:
            # Pad by replicating the last point: duplicates never change a max,
            # so no in-kernel padding mask is needed on any tile.
            x_pts = jnp.pad(x_pts, ((0, 0), (0, n_padded - N), (0, 0)),
                            mode="edge")
    n_tiles = n_padded // tile_n

    const2 = lambda b, t: (0, 0)
    in_specs = [
        # streamed point tile (auto double-buffered by the pipeline)
        pl.BlockSpec((None, tile_n, 3), lambda b, t: (b, t, 0)),
        # weights/biases: full-array blocks, constant index maps -> VMEM-resident
        pl.BlockSpec(w1.shape, const2), pl.BlockSpec(b1.shape, const2),
        pl.BlockSpec(w2.shape, const2), pl.BlockSpec(b2.shape, const2),
        pl.BlockSpec(w3.shape, const2),
    ]

    gmax = pl.pallas_call(
        functools.partial(_pointnet_feat_kernel, c_chunk=C_CHUNK),
        out_shape=jax.ShapeDtypeStruct((B, 1, FEAT), jnp.float32),
        grid_spec=pltpu.PrefetchScalarGridSpec(
            num_scalar_prefetch=0,
            grid=(B, n_tiles),
            in_specs=in_specs,
            # lane-dense (1, 1024) output block; same block across the point
            # axis -> acts as the running-max accumulator.
            out_specs=pl.BlockSpec((None, 1, FEAT), lambda b, t: (b, 0, 0)),
        ),
        compiler_params=pltpu.CompilerParams(
            dimension_semantics=("parallel", "arbitrary"),
            vmem_limit_bytes=48 * 1024 * 1024,
        ),
    )(x_pts, w1, b1, w2, b2, w3)
    gmax = gmax.reshape(B, FEAT)

    # --- classifier head outside the kernel: batched (B, 1024) MXU matmuls.
    g = gmax + b3  # deferred conv3/bn3 bias: max(h + b3) == max(h) + b3
    f = jnp.maximum(
        jnp.dot(g.astype(jnp.bfloat16), w4, preferred_element_type=jnp.float32)
        + b4, 0.0)
    # TODO(synk): dropout(p=0.3) is identity (eval-mode forward only).
    f = jnp.maximum(
        jnp.dot(f.astype(jnp.bfloat16), w5, preferred_element_type=jnp.float32)
        + b5, 0.0)
    return (jnp.dot(f.astype(jnp.bfloat16), w6,
                    preferred_element_type=jnp.float32) + b6)


def pointnet_ref(x, params):
    """Pure-JAX reference mirroring the kernel's numerics (f32 layer 1, bf16 MXU)."""
    w1, b1, w2, b2, w3, b3, w4, b4, w5, b5, w6, b6 = params
    B, C, N = x.shape
    h = jnp.transpose(x, (0, 2, 1)).astype(jnp.float32).reshape(B * N, C)
    h = jnp.maximum(jnp.dot(h, w1, preferred_element_type=jnp.float32) + b1, 0.0)
    h = jnp.maximum(jnp.dot(h.astype(jnp.bfloat16), w2,
                            preferred_element_type=jnp.float32) + b2, 0.0)
    h = jnp.dot(h.astype(jnp.bfloat16), w3, preferred_element_type=jnp.float32) + b3
    g = jnp.max(h.reshape(B, N, FEAT), axis=1)
    f = jnp.maximum(jnp.dot(g.astype(jnp.bfloat16), w4,
                            preferred_element_type=jnp.float32) + b4, 0.0)
    f = jnp.maximum(jnp.dot(f.astype(jnp.bfloat16), w5,
                            preferred_element_type=jnp.float32) + b5, 0.0)
    return jnp.dot(f.astype(jnp.bfloat16), w6,
                   preferred_element_type=jnp.float32) + b6


if __name__ == "__main__":
    key = jax.random.PRNGKey(0)
    k_param, k_x1, k_x2 = jax.random.split(key, 3)
    params = init_params(k_param)

    # small check: batch=2, 16 points, 3 input channels (fixed by the module)
    B, N = 2, 16
    x = jax.random.normal(k_x1, (B, 3, N), jnp.float32)
    out = jax.block_until_ready(pointnet_forward(x, params))
    ref = pointnet_ref(x, params)
    assert out.shape == (B, 4)
    assert jnp.allclose(out, ref, atol=1e-2, rtol=1e-2)

    # multi-tile check: exercises the running-max output accumulator, the
    # chunked layer-3 path, and the edge-replication point padding
    # (44 points, tile of 8 -> 6 tiles, 4 padded points).
    B2, N2 = 2, 44
    x2 = jax.random.normal(k_x2, (B2, 3, N2), jnp.float32)
    out2 = jax.block_until_ready(pointnet_forward(x2, params, max_tile_n=8))
    ref2 = pointnet_ref(x2, params)
    assert out2.shape == (B2, 4)
    assert jnp.allclose(out2, ref2, atol=1e-2, rtol=1e-2)

    print("KERNEL_OK")
</pallas_src>

<mosaic_0001>
module attributes {stable_mosaic.version = 11 : i64} {
  func.func @_pointnet_feat_kernel(%arg0: i32, %arg1: i32, %arg2: memref<1x16x3xf32, #tpu.memory_space<vmem>>, %arg3: memref<3x64xf32, #tpu.memory_space<vmem>>, %arg4: memref<1x64xf32, #tpu.memory_space<vmem>>, %arg5: memref<64x128xbf16, #tpu.memory_space<vmem>>, %arg6: memref<1x128xf32, #tpu.memory_space<vmem>>, %arg7: memref<128x1024xbf16, #tpu.memory_space<vmem>>, %arg8: memref<1x1x1024xf32, #tpu.memory_space<vmem>>) attributes {dimension_semantics = [#tpu.dimension_semantics<parallel>, #tpu.dimension_semantics<arbitrary>], iteration_bounds = array<i64: 2, 1>, scalar_prefetch = 0 : i64, scratch_operands = 0 : i64, tpu.core_type = #tpu.core_type<tc>, window_params = [{transform_indices = @transform_0, window_bounds = array<i64: 1, 16, 3>}, {pipeline_mode = #tpu.pipeline_mode<synchronous>, transform_indices = @transform_1, window_bounds = array<i64: 3, 64>}, {pipeline_mode = #tpu.pipeline_mode<synchronous>, transform_indices = @transform_2, window_bounds = array<i64: 1, 64>}, {pipeline_mode = #tpu.pipeline_mode<synchronous>, transform_indices = @transform_3, window_bounds = array<i64: 64, 128>}, {pipeline_mode = #tpu.pipeline_mode<synchronous>, transform_indices = @transform_4, window_bounds = array<i64: 1, 128>}, {pipeline_mode = #tpu.pipeline_mode<synchronous>, transform_indices = @transform_5, window_bounds = array<i64: 128, 1024>}, {transform_indices = @transform_6, window_bounds = array<i64: 1, 1, 1024>}]} {
    %c0_i32 = arith.constant 0 : i32
    %0 = arith.cmpi eq, %arg1, %c0_i32 : i32
    %1 = arith.extui %0 : i1 to i32
    %c0_i32_0 = arith.constant 0 : i32
    %2 = arith.cmpi ne, %1, %c0_i32_0 : i32
    scf.if %2 {
      %cst_52 = arith.constant 0xFF800000 : f32
      %76 = vector.broadcast %cst_52 : f32 to vector<1x1024xf32>
      %c0_53 = arith.constant 0 : index
      %c0_54 = arith.constant 0 : index
      %c0_55 = arith.constant 0 : index
      %77 = vector.load %arg8[%c0_53, %c0_54, %c0_55] : memref<1x1x1024xf32, #tpu.memory_space<vmem>>, vector<1x1x1024xf32>
      %78 = vector.shape_cast %77 : vector<1x1x1024xf32> to vector<1x1024xf32>
      %79 = vector.shape_cast %76 : vector<1x1024xf32> to vector<1x1x1024xf32>
      tpu.vector_store %arg8[%c0_53, %c0_54, %c0_55], %79 {strides = array<i32>} : memref<1x1x1024xf32, #tpu.memory_space<vmem>>, vector<1x1x1024xf32>,
    } else {
    }
    %c0 = arith.constant 0 : index
    %c0_1 = arith.constant 0 : index
    %c0_2 = arith.constant 0 : index
    %3 = vector.load %arg2[%c0, %c0_1, %c0_2] : memref<1x16x3xf32, #tpu.memory_space<vmem>>, vector<1x16x3xf32>
    %4 = vector.shape_cast %3 : vector<1x16x3xf32> to vector<16x3xf32>
    %5 = vector.extract_strided_slice %4 {offsets = [0, 0], sizes = [16, 1], strides = [1, 1]} : vector<16x3xf32> to vector<16x1xf32>
    %c0_3 = arith.constant 0 : index
    %c0_4 = arith.constant 0 : index
    %6 = vector.load %arg3[%c0_3, %c0_4] : memref<3x64xf32, #tpu.memory_space<vmem>>, vector<1x64xf32>
    %7 = vector.broadcast %5 : vector<16x1xf32> to vector<16x64xf32>
    %8 = vector.broadcast %6 : vector<1x64xf32> to vector<16x64xf32>
    %9 = arith.mulf %7, %8 : vector<16x64xf32>
    %10 = vector.extract_strided_slice %4 {offsets = [0, 1], sizes = [16, 1], strides = [1, 1]} : vector<16x3xf32> to vector<16x1xf32>
    %c1 = arith.constant 1 : index
    %c0_5 = arith.constant 0 : index
    %11 = vector.load %arg3[%c1, %c0_5] : memref<3x64xf32, #tpu.memory_space<vmem>>, vector<1x64xf32>
    %12 = vector.broadcast %10 : vector<16x1xf32> to vector<16x64xf32>
    %13 = vector.broadcast %11 : vector<1x64xf32> to vector<16x64xf32>
    %14 = arith.mulf %12, %13 : vector<16x64xf32>
    %15 = arith.addf %9, %14 : vector<16x64xf32>
    %16 = vector.extract_strided_slice %4 {offsets = [0, 2], sizes = [16, 1], strides = [1, 1]} : vector<16x3xf32> to vector<16x1xf32>
    %c2 = arith.constant 2 : index
    %c0_6 = arith.constant 0 : index
    %17 = vector.load %arg3[%c2, %c0_6] : memref<3x64xf32, #tpu.memory_space<vmem>>, vector<1x64xf32>
    %18 = vector.broadcast %16 : vector<16x1xf32> to vector<16x64xf32>
    %19 = vector.broadcast %17 : vector<1x64xf32> to vector<16x64xf32>
    %20 = arith.mulf %18, %19 : vector<16x64xf32>
    %21 = arith.addf %15, %20 : vector<16x64xf32>
    %c0_7 = arith.constant 0 : index
    %c0_8 = arith.constant 0 : index
    %22 = vector.load %arg4[%c0_7, %c0_8] : memref<1x64xf32, #tpu.memory_space<vmem>>, vector<1x64xf32>
    %23 = vector.broadcast %22 : vector<1x64xf32> to vector<16x64xf32>
    %24 = arith.addf %21, %23 : vector<16x64xf32>
    %cst = arith.constant 0.000000e+00 : f32
    %25 = vector.broadcast %cst : f32 to vector<16x64xf32>
    %26 = arith.maximumf %24, %25 : vector<16x64xf32>
    %27 = arith.truncf %26 : vector<16x64xf32> to vector<16x64xbf16>
    %c0_9 = arith.constant 0 : index
    %c0_10 = arith.constant 0 : index
    %28 = vector.load %arg5[%c0_9, %c0_10] : memref<64x128xbf16, #tpu.memory_space<vmem>>, vector<64x128xbf16>
    %cst_11 = arith.constant dense<0.000000e+00> : vector<16x128xf32>
    %29 = tpu.matmul %27, %28, %cst_11 {dimension_numbers = #tpu.dot_dimension_numbers<[1], [0], [0], [1], [0, 0, 1, 1], [], []>} : vector<16x64xbf16>, vector<64x128xbf16>, vector<16x128xf32> -> vector<16x128xf32>
    %c0_12 = arith.constant 0 : index
    %c0_13 = arith.constant 0 : index
    %30 = vector.load %arg6[%c0_12, %c0_13] : memref<1x128xf32, #tpu.memory_space<vmem>>, vector<1x128xf32>
    %31 = vector.broadcast %30 : vector<1x128xf32> to vector<16x128xf32>
    %32 = arith.addf %29, %31 : vector<16x128xf32>
    %cst_14 = arith.constant 0.000000e+00 : f32
    %33 = vector.broadcast %cst_14 : f32 to vector<16x128xf32>
    %34 = arith.maximumf %32, %33 : vector<16x128xf32>
    %35 = arith.truncf %34 : vector<16x128xf32> to vector<16x128xbf16>
    %c0_15 = arith.constant 0 : index
    %c0_16 = arith.constant 0 : index
    %36 = vector.load %arg7[%c0_15, %c0_16] : memref<128x1024xbf16, #tpu.memory_space<vmem>>, vector<128x256xbf16>
    %cst_17 = arith.constant dense<0.000000e+00> : vector<16x256xf32>
    %37 = tpu.matmul %35, %36, %cst_17 {dimension_numbers = #tpu.dot_dimension_numbers<[1], [0], [0], [1], [0, 0, 1, 1], [], []>} : vector<16x128xbf16>, vector<128x256xbf16>, vector<16x256xf32> -> vector<16x256xf32>
    %c0_18 = arith.constant 0 : index
    %c0_19 = arith.constant 0 : index
    %c0_20 = arith.constant 0 : index
    %38 = vector.load %arg8[%c0_18, %c0_19, %c0_20] : memref<1x1x1024xf32, #tpu.memory_space<vmem>>, vector<1x1x256xf32>
    %39 = vector.shape_cast %38 : vector<1x1x256xf32> to vector<1x256xf32>
    %cst_21 = arith.constant dense<0xFF800000> : vector<256xf32>
    %40 = vector.multi_reduction <maximumf>, %37, %cst_21 [0] : vector<16x256xf32> to vector<256xf32>
    %41 = vector.shape_cast %40 : vector<256xf32> to vector<1x256xf32>
    %42 = arith.maximumf %39, %41 : vector<1x256xf32>
    %c0_22 = arith.constant 0 : index
    %c0_23 = arith.constant 0 : index
    %c0_24 = arith.constant 0 : index
    %43 = vector.load %arg8[%c0_22, %c0_23, %c0_24] : memref<1x1x1024xf32, #tpu.memory_space<vmem>>, vector<1x1x256xf32>
    %44 = vector.shape_cast %43 : vector<1x1x256xf32> to vector<1x256xf32>
    %45 = vector.shape_cast %42 : vector<1x256xf32> to vector<1x1x256xf32>
    tpu.vector_store %arg8[%c0_22, %c0_23, %c0_24], %45 {strides = array<i32>} : memref<1x1x1024xf32, #tpu.memory_space<vmem>>, vector<1x1x256xf32>,
    %c0_25 = arith.constant 0 : index
    %c256 = arith.constant 256 : index
    %46 = vector.load %arg7[%c0_25, %c256] : memref<128x1024xbf16, #tpu.memory_space<vmem>>, vector<128x256xbf16>
    %cst_26 = arith.constant dense<0.000000e+00> : vector<16x256xf32>
    %47 = tpu.matmul %35, %46, %cst_26 {dimension_numbers = #tpu.dot_dimension_numbers<[1], [0], [0], [1], [0, 0, 1, 1], [], []>} : vector<16x128xbf16>, vector<128x256xbf16>, vector<16x256xf32> -> vector<16x256xf32>
    %c0_27 = arith.constant 0 : index
    %c0_28 = arith.constant 0 : index
    %c256_29 = arith.constant 256 : index
    %48 = vector.load %arg8[%c0_27, %c0_28, %c256_29] : memref<1x1x1024xf32, #tpu.memory_space<vmem>>, vector<1x1x256xf32>
    %49 = vector.shape_cast %48 : vector<1x1x256xf32> to vector<1x256xf32>
    %cst_30 = arith.constant dense<0xFF800000> : vector<256xf32>
    %50 = vector.multi_reduction <maximumf>, %47, %cst_30 [0] : vector<16x256xf32> to vector<256xf32>
    %51 = vector.shape_cast %50 : vector<256xf32> to vector<1x256xf32>
    %52 = arith.maximumf %49, %51 : vector<1x256xf32>
    %c0_31 = arith.constant 0 : index
    %c0_32 = arith.constant 0 : index
    %c256_33 = arith.constant 256 : index
    %53 = vector.load %arg8[%c0_31, %c0_32, %c256_33] : memref<1x1x1024xf32, #tpu.memory_space<vmem>>, vector<1x1x256xf32>
    %54 = vector.shape_cast %53 : vector<1x1x256xf32> to vector<1x256xf32>
    %55 = vector.shape_cast %52 : vector<1x256xf32> to vector<1x1x256xf32>
    tpu.vector_store %arg8[%c0_31, %c0_32, %c256_33], %55 {strides = array<i32>} : memref<1x1x1024xf32, #tpu.memory_space<vmem>>, vector<1x1x256xf32>,
    %c0_34 = arith.constant 0 : index
    %c512 = arith.constant 512 : index
    %56 = vector.load %arg7[%c0_34, %c512] : memref<128x1024xbf16, #tpu.memory_space<vmem>>, vector<128x256xbf16>
    %cst_35 = arith.constant dense<0.000000e+00> : vector<16x256xf32>
    %57 = tpu.matmul %35, %56, %cst_35 {dimension_numbers = #tpu.dot_dimension_numbers<[1], [0], [0], [1], [0, 0, 1, 1], [], []>} : vector<16x128xbf16>, vector<128x256xbf16>, vector<16x256xf32> -> vector<16x256xf32>
    %c0_36 = arith.constant 0 : index
    %c0_37 = arith.constant 0 : index
    %c512_38 = arith.constant 512 : index
    %58 = vector.load %arg8[%c0_36, %c0_37, %c512_38] : memref<1x1x1024xf32, #tpu.memory_space<vmem>>, vector<1x1x256xf32>
    %59 = vector.shape_cast %58 : vector<1x1x256xf32> to vector<1x256xf32>
    %cst_39 = arith.constant dense<0xFF800000> : vector<256xf32>
    %60 = vector.multi_reduction <maximumf>, %57, %cst_39 [0] : vector<16x256xf32> to vector<256xf32>
    %61 = vector.shape_cast %60 : vector<256xf32> to vector<1x256xf32>
    %62 = arith.maximumf %59, %61 : vector<1x256xf32>
    %c0_40 = arith.constant 0 : index
    %c0_41 = arith.constant 0 : index
    %c512_42 = arith.constant 512 : index
    %63 = vector.load %arg8[%c0_40, %c0_41, %c512_42] : memref<1x1x1024xf32, #tpu.memory_space<vmem>>, vector<1x1x256xf32>
    %64 = vector.shape_cast %63 : vector<1x1x256xf32> to vector<1x256xf32>
    %65 = vector.shape_cast %62 : vector<1x256xf32> to vector<1x1x256xf32>
    tpu.vector_store %arg8[%c0_40, %c0_41, %c512_42], %65 {strides = array<i32>} : memref<1x1x1024xf32, #tpu.memory_space<vmem>>, vector<1x1x256xf32>,
    %c0_43 = arith.constant 0 : index
    %c768 = arith.constant 768 : index
    %66 = vector.load %arg7[%c0_43, %c768] : memref<128x1024xbf16, #tpu.memory_space<vmem>>, vector<128x256xbf16>
    %cst_44 = arith.constant dense<0.000000e+00> : vector<16x256xf32>
    %67 = tpu.matmul %35, %66, %cst_44 {dimension_numbers = #tpu.dot_dimension_numbers<[1], [0], [0], [1], [0, 0, 1, 1], [], []>} : vector<16x128xbf16>, vector<128x256xbf16>, vector<16x256xf32> -> vector<16x256xf32>
    %c0_45 = arith.constant 0 : index
    %c0_46 = arith.constant 0 : index
    %c768_47 = arith.constant 768 : index
    %68 = vector.load %arg8[%c0_45, %c0_46, %c768_47] : memref<1x1x1024xf32, #tpu.memory_space<vmem>>, vector<1x1x256xf32>
    %69 = vector.shape_cast %68 : vector<1x1x256xf32> to vector<1x256xf32>
    %cst_48 = arith.constant dense<0xFF800000> : vector<256xf32>
    %70 = vector.multi_reduction <maximumf>, %67, %cst_48 [0] : vector<16x256xf32> to vector<256xf32>
    %71 = vector.shape_cast %70 : vector<256xf32> to vector<1x256xf32>
    %72 = arith.maximumf %69, %71 : vector<1x256xf32>
    %c0_49 = arith.constant 0 : index
    %c0_50 = arith.constant 0 : index
    %c768_51 = arith.constant 768 : index
    %73 = vector.load %arg8[%c0_49, %c0_50, %c768_51] : memref<1x1x1024xf32, #tpu.memory_space<vmem>>, vector<1x1x256xf32>
    %74 = vector.shape_cast %73 : vector<1x1x256xf32> to vector<1x256xf32>
    %75 = vector.shape_cast %72 : vector<1x256xf32> to vector<1x1x256xf32>
    tpu.vector_store %arg8[%c0_49, %c0_50, %c768_51], %75 {strides = array<i32>} : memref<1x1x1024xf32, #tpu.memory_space<vmem>>, vector<1x1x256xf32>,
    return
  }
  func.func @transform_0(%arg0: i32, %arg1: i32) -> (i32, i32, i32) {
    %c0_i32 = arith.constant 0 : i32
    %c0_i32_0 = arith.constant 0 : i32
    return %arg0, %arg1, %c0_i32 : i32, i32, i32
  }
  func.func @transform_1(%arg0: i32, %arg1: i32) -> (i32, i32) {
    %c0_i32 = arith.constant 0 : i32
    %c0_i32_0 = arith.constant 0 : i32
    %c0_i32_1 = arith.constant 0 : i32
    return %c0_i32, %c0_i32_0 : i32, i32
  }
  func.func @transform_2(%arg0: i32, %arg1: i32) -> (i32, i32) {
    %c0_i32 = arith.constant 0 : i32
    %c0_i32_0 = arith.constant 0 : i32
    %c0_i32_1 = arith.constant 0 : i32
    return %c0_i32, %c0_i32_0 : i32, i32
  }
  func.func @transform_3(%arg0: i32, %arg1: i32) -> (i32, i32) {
    %c0_i32 = arith.constant 0 : i32
    %c0_i32_0 = arith.constant 0 : i32
    %c0_i32_1 = arith.constant 0 : i32
    return %c0_i32, %c0_i32_0 : i32, i32
  }
  func.func @transform_4(%arg0: i32, %arg1: i32) -> (i32, i32) {
    %c0_i32 = arith.constant 0 : i32
    %c0_i32_0 = arith.constant 0 : i32
    %c0_i32_1 = arith.constant 0 : i32
    return %c0_i32, %c0_i32_0 : i32, i32
  }
  func.func @transform_5(%arg0: i32, %arg1: i32) -> (i32, i32) {
    %c0_i32 = arith.constant 0 : i32
    %c0_i32_0 = arith.constant 0 : i32
    %c0_i32_1 = arith.constant 0 : i32
    return %c0_i32, %c0_i32_0 : i32, i32
  }
  func.func @transform_6(%arg0: i32, %arg1: i32) -> (i32, i32, i32) {
    %c0_i32 = arith.constant 0 : i32
    %c0_i32_0 = arith.constant 0 : i32
    %c0_i32_1 = arith.constant 0 : i32
    return %arg0, %c0_i32, %c0_i32_0 : i32, i32, i32
  }
}

</mosaic_0001>

<bundles_post_ra>
// kernel: tpu_custom_call.1
= control target key start
LH: loop header
LB: loop body
LE: loop exit
PB: predicated region body
PF: predicated region fallthrough
CT: control target
= control target key end

     0   :  { %11 = vsyncpa [#allocation3], 0  ;;  %s1837_s0 = inlined_call_operand.vmem [shape: f32[2,16,3], index: 0, kind: input, shape index: {}]   ;;  %s1838_s1 = inlined_call_operand.vmem [shape: f32[3,64], index: 1, kind: input, shape index: {}]   ;;  %s1839_s2 = inlined_call_operand.vmem [shape: f32[1,64], index: 2, kind: input, shape index: {}]   ;;  %s1840_s3 = inlined_call_operand.vmem [shape: bf16[64,128], index: 3, kind: input, shape index: {}]   ;;  %s1841_s4 = inlined_call_operand.vmem [shape: f32[1,128], index: 4, kind: input, shape index: {}]   ;;  %s1842_s5 = inlined_call_operand.hbm [shape: bf16[128,1024], index: 5, kind: input, shape index: {}]   ;;  %s1843_s6 = inlined_call_operand.hbm [shape: f32[2,1,1024], index: 6, kind: output, shape index: {}]  }
   0x1   :  { %12 = vsyncpa [#allocation4], 0 }
   0x2   :  { %14 = vsyncpa [#allocation4 + $0x1], 0  ;;  %s1600_s21 = smov 0   ;;  %s1602_s22 = smov 0  }
   0x3   :  { %s1604_s23 = smov 0   ;;  %s1606_s24 = smov 0  }
   0x4   :  { %s1608_s25 = smov 0   ;;  %s1610_s26 = smov 0  }
   0x5 LB: > { %s1251_s27 = sadd.s32 4294967295, %s1552_s26   ;;  %s1252_s28 = sadd.s32 4294967294, %s1552_s26   ;;  %s1552_s26 = sphi %s1610_s26, %s20_s26   ;;  %s1548_s25 = sphi %s1608_s25, %s1863_s25   ;;  %s1544_s24 = sphi %s1606_s24, %s1862_s24   ;;  %s1540_s23 = sphi %s1604_s23, %s1861_s23   ;;  %s1536_s22 = sphi %s1602_s22, %s1860_s22   ;;  %s1532_s21 = sphi %s1600_s21, %s1859_s21  }
   0x6   : > { %s32_s29 = sadd.s32 1, %s1548_s25  ;;  %s172_s30 = sadd.s32 1, %s1540_s23 }
   0x7   : > { %p34_p0 = scmp.ge.s32.totalorder %s32_s29, 2  ;;  %p182_p1 = scmp.ne.s32.totalorder %s1540_s23, %s1536_s22 }
   0x8   : > { %p183_p2 = scmp.eq.s32.totalorder %s1251_s27, 1  ;;  %p188_p3 = scmp.ne.s32.totalorder %s1536_s22, %s1532_s21 }
   0x9   : > { %s1865_s29 = smov (%p34_p0, %s32_s29), 0  ;;  %p189_p5 = scmp.eq.s32.totalorder %s1252_s28, 1 }
   0xa   : > { %p1640_p4 = por %p183_p2, %p182_p1  ;;  %s169_s8 = ssub.s32 %s1548_s25, %s1865_s29 }
   0xb   : > { %p1253_p6 = scmp.ge.s32.totalorder %s1552_s26, 1  ;;  %p170_p7 = scmp.eq.s32.totalorder %s169_s8, 0 }
   0xc   : > { %s1848_s7 = scalar_select %p1640_p4, 1, 0 }
   0xd   : > { %p1647_p8 = por %p189_p5, %p188_p3  ;;  %p196_p9 = scmp.lt.s32.totalorder %s1552_s26, 3 }
   0xe   : > { %s1653_s10 = scalar_select %p170_p7, %s1540_s23, %s172_s30  }
   0xf   : > { %s1849_s9 = scalar_select %p1647_p8, 1, 0 }
  0x10   : > { %p1655_p10 = pnand %p1253_p6, %p196_p9  ;;  %p1659_p11 = scmp.eq.s32.totalorder %s1251_s27, 0 }
  0x11   : > { %s1554_s13 = smov [#allocation2]   ;;  %s1442_s18 = scalar_lea.hbm %s1842_s5, 8192 }
  0x12   : > { %s1850_s11 = scalar_select %p1655_p10, 1, 0 }
  0x13   : > { %s1851_s12 = scalar_select %p1659_p11, 1, 0 }
  0x14   : > { %p1365_p12 = pneg %p1655_p10  ;;  %s220_s14 = sshll.u32 %s1554_s13, 4  ;;  %s221_s14 = int_to_ptr.vmem [resolvable:$true] %s220_s14 }
  0x15   : > { %p1443_p0 = scmp.ne.s32.totalorder %s1842_s5, %s1442_s18  ;;  %p1449_p5 = scmp.lt.u32.totalorder %s1442_s18, %s1842_s5 }
  0x16   : > { %p1667_p13 = pnand %p1659_p11, %p1365_p12 }
  0x18   : > { %p1444_p1 = pneg %p1667_p13 }
  0x1a   : > { %p1445_p2 = pnand %p1444_p1, %p1443_p0 }
  0x1c   : > { %p1446_p3 = pneg %p1445_p2 }
  0x1e   : > { %p1451_p6 = pnand %p1449_p5, %p1446_p3 }
  0x20   : > { %1454 = shalt.err (!%p1451_p6)
}
  0x21   : > { %s1455_s30 = scalar_lea.vmem %s221_s14, 8192  ;;  %p1463_p8 = scmp.lt.s32.totalorder %s221_s14, %s221_s14 }
  0x22   : > { %p1456_p7 = scmp.ne.s32.totalorder %s221_s14, %s1455_s30  ;;  %p1464_p4 = scmp.lt.s32.totalorder %s1455_s30, %s1455_s30 }
  0x24   : > { %p1458_p9 = pnand %p1456_p7, %p1444_p1  ;;  %p1465_p11 = por %p1464_p4, %p1463_p8 }
  0x26   : > { %p1459_p12 = pneg %p1458_p9 }
  0x28   : > { %p1466_p10 = pnand %p1465_p11, %p1459_p12 }
  0x2a   : > { %1469 = shalt.err (!%p1466_p10)
}
  0x2b   : > { %s1555_s8 = smov 512   ;;  %s1556_s13 = smov 32  }
  0x2c   : > { %1368 = dma.hbm_to_vmem [thread:$0]  (!%p1667_p13), %s1842_s5, 8192, %s221_s14, [#allocation3], %s1555_s8, %s1555_s8, %s1556_s13  }
  0x2d   : > { %p1853_p0 = scmp.ne.s32.totalorder %s1850_s11, 0 }
  0x2e   : > { %p1854_p2 = scmp.ne.s32.totalorder (!%p1853_p0), %s1851_s12, 0 }
  0x2f   : > { %249 = sbr.rel (%p1853_p0) target bundleno = 712 (0x2c8), region = 44 }
  0x36   : > { %1523 = dma.done.wait (%p1854_p2), [#allocation3], 8192  }
  0x37   : > { %1525 = vsyncadd (%p1854_p2), [#allocation3], 4294959104  ;;  %p284_p4 = scmp.lt.s32.totalorder %s1544_s24, 1  ;;  %v1557_v0 = vmov 1   ;;  %v1558_v1 = vmov 0   ;;  %v1438_v4 = vld [vmem:[%s1840_s3] sm:$0xff]  }
  0x38   : > { %1435 = vset.pattern.permute.xlu1 %v1557_v0  ;;  %1434 = vset.pattern.permute.xlu0 %v1558_v1  ;;  %v1559_v5 = vmov 0.0   ;;  %v1439_v6 = vld [vmem:[%s1840_s3 + $0x8] sm:$0xff]   ;;  %v1560_v7 = vmov 2   ;;  %v1440_v8 = vld [vmem:[%s1840_s3 + $0x10] sm:$0xff]   ;;  %v1441_v9 = vld [vmem:[%s1840_s3 + $0x18] sm:$0xff]   ;;  %vm1561_vm0 = vmmov 0  }
  0x39   : > { %s285_s15 = scalar_select %p284_p4, %s1544_s24, 1  ;;  %579 = vmatprep.mubr.bf16.mxu1 %v1558_v1  ;;  %1347 = vmatprep.subr.bf16.mxu0 %v1559_v5  ;;  %v451_v10 = vld [vmem:[#allocation2] sm:$0xff]  ;;  %v1712_v12 = vld [vmem:[#allocation2 + $0x8] sm:$0xff]  ;;  %vm403_vm1 = vcmask 523264  }
  0x3a   : > { %1348 = vmatpush3.bf16.msra.mxu0 %v1438_v4  ;;  %1355 = vmatprep.mubr.msk.bf16.mxu0 %vm1561_vm0, %v1559_v5  ;;  %v452_v11 = vld [vmem:[#allocation2 + $0x20] sm:$0xff]  ;;  %v1714_v14 = vld [vmem:[#allocation2 + $0x28] sm:$0xff]  ;;  %s280_s30 = sand.u32 1, %s1536_s22   ;;  %s1341_s16 = sshll.u32 %s1544_s24, 7 }
  0x3b   : > { %s1340_s14 = sshll.u32 %s285_s15, 4  ;;  %1349 = vmatprep.subr.bf16.mxu0 %v1559_v5  ;;  %v1272_v13 = vcombine.high %v451_v10, %v452_v11  ;;  %v1271_v15 = vcombine.low %v451_v10, %v452_v11  ;;  %v453_v16 = vld [vmem:[#allocation2 + $0x40] sm:$0xff]  ;;  %v1287_v18 = vcombine.low %v1712_v12, %v1714_v14  ;;  %v1288_v19 = vcombine.high %v1712_v12, %v1714_v14  ;;  %v631_v60 = vld [vmem:[#allocation2 + $0x48] sm:$0xff]  ;;  %s1258_s8 = sshll.u32 %s280_s30, 3 }
  0x3c   : > { %s291_s19 = scalar_lea.vmem %s1837_s0, %s1340_s14  ;;  %v454_v17 = vld [vmem:[#allocation2 + $0x60] sm:$0xff]  ;;  %v632_v61 = vld [vmem:[#allocation2 + $0x68] sm:$0xff]  ;;  %s1750_s13 = scalar_lea.vmem [#allocation5], %s1258_s8 }
  0x3d   : > { %v299_v2 = vld [vmem:[%s291_s19] sm:$0xff]  ;;  %v300_v3 = vld [vmem:[%s291_s19 + $0x8] sm:$0xff]  ;;  %v1274_v20 = vcombine.high %v453_v16, %v454_v17  ;;  %547 = vmatprep.subr.bf16.mxu1 %v1272_v13  ;;  %v1273_v21 = vcombine.low %v453_v16, %v454_v17  ;;  %s1166_s17 = sshll.u32 %s1750_s13, 4  ;;  %s1782_s11 = scalar_lea.hbm %s1843_s6, %s1341_s16  ;;  %s1784_s17 = int_to_ptr.vmem [resolvable:$true] %s1166_s17 }
  0x3e   : > { %320 = vperm.xlu1 %1435, %v299_v2   ;;  %304 = vperm.xlu0 %1434, %v299_v2   ;;  %v455_v22 = vld [vmem:[#allocation2 + $0x80] sm:$0xff]  ;;  %v634_v4 = vld [vmem:[#allocation2 + $0xa8] sm:$0xff]  ;;  %s1152_s24 = scalar_lea.sflag [#allocation4], %s280_s30  ;;  %s1470_s18 = scalar_lea.vmem %s1784_s17, 128 }
  0x3f   : > { %1350 = vmatpush3.bf16.msra.mxu0 %v1439_v6  ;;  %548 = vmatpush1.bf16.msra.mxu1 %v1271_v15  ;;  %v456_v23 = vld [vmem:[#allocation2 + $0xa0] sm:$0xff]  ;;  %v637_v11 = vld [vmem:[#allocation2 + $0x108] sm:$0xff]  ;;  %p1471_p8 = scmp.ne.s32.totalorder %s1784_s17, %s1470_s18  ;;  %p1857_p10 = scmp.ne.s32.totalorder %s1848_s7, 0 }
  0x40   : > { %1351 = vmatprep.subr.bf16.mxu0 %v1559_v5  ;;  %549 = vmatprep.subr.bf16.mxu1 %v1274_v20  ;;  %v1276_v24 = vcombine.high %v455_v22, %v456_v23  ;;  %v1275_v25 = vcombine.low %v455_v22, %v456_v23  ;;  %v457_v26 = vld [vmem:[#allocation2 + $0xc0] sm:$0xff]  ;;  %v638_v13 = vld [vmem:[#allocation2 + $0x128] sm:$0xff]  ;;  %s1564_s19 = smov [#allocation5]  }
  0x41   : > { %v458_v27 = vld [vmem:[#allocation2 + $0xe0] sm:$0xff]  ;;  %v1296_v16 = vcombine.high %v637_v11, %v638_v13  ;;  %v639_v17 = vld [vmem:[#allocation2 + $0x148] sm:$0xff]  ;;  %v1295_v14 = vcombine.low %v637_v11, %v638_v13  ;;  %p1472_p11 = pnand %p1471_p8, %p1857_p10  ;;  %s1474_s12 = sshll.u32 %s1564_s19, 4  ;;  %s1475_s12 = int_to_ptr.vmem [resolvable:$false] %s1474_s12 }
  0x42   : > { %324 = vperm.xlu1 %1435, %v300_v3   ;;  %309 = vperm.xlu0 %1434, %v300_v3   ;;  %v1278_v28 = vcombine.high %v457_v26, %v458_v27  ;;  %v1277_v29 = vcombine.low %v457_v26, %v458_v27  ;;  %v459_v30 = vld [vmem:[#allocation2 + $0x100] sm:$0xff]  ;;  %v640_v12 = vld [vmem:[#allocation2 + $0x168] sm:$0xff]  ;;  %s1476_s20 = scalar_lea.vmem %s1475_s12, 256  ;;  %p1477_p1 = scmp.lt.s32.totalorder %s1784_s17, %s1475_s12 }
  0x43   : > { %1352 = vmatpush3.bf16.msra.mxu0 %v1440_v8  ;;  %550 = vmatpush1.bf16.msra.mxu1 %v1273_v21  ;;  %v460_v31 = vld [vmem:[#allocation2 + $0x120] sm:$0xff]  ;;  %v636_v8 = vld [vmem:[#allocation2 + $0xe8] sm:$0xff]  ;;  %p1473_p13 = pneg %p1472_p11  ;;  %p1478_p3 = scmp.lt.s32.totalorder %s1476_s20, %s1470_s18 }
  0x44   : > { %1353 = vmatprep.subr.bf16.mxu0 %v1559_v5  ;;  %551 = vmatprep.subr.bf16.mxu1 %v1276_v24  ;;  %v1280_v32 = vcombine.high %v459_v30, %v460_v31  ;;  %v1279_v33 = vcombine.low %v459_v30, %v460_v31  ;;  %v461_v34 = vld [vmem:[#allocation2 + $0x140] sm:$0xff]  ;;  %v1289_v5 = vcombine.low %v631_v60, %v632_v61  ;;  %v641_v22 = vld [vmem:[#allocation2 + $0x188] sm:$0xff] }
  0x45   : > { %v462_v35 = vld [vmem:[#allocation2 + $0x160] sm:$0xff]  ;;  %v642_v24 = vld [vmem:[#allocation2 + $0x1a8] sm:$0xff]  ;;  %p1479_p5 = por %p1478_p3, %p1477_p1 }
  0x46   : > { %1437 = vset.pattern.permute.xlu1 %v1560_v7  ;;  %1436 = vset.pattern.permute.xlu0 %v1560_v7  ;;  %v1282_v36 = vcombine.high %v461_v34, %v462_v35  ;;  %v1281_v37 = vcombine.low %v461_v34, %v462_v35  ;;  %v1262_v40 = vld [vmem:[%s1838_s1 + $0x1] ss:$0 sm:$0xff]  ;;  %v1261_v41 = vld [vmem:[%s1838_s1] ss:$0 sm:$0xff]  ;;  %v1263_v48 = vld [vmem:[%s1838_s1 + $0x2] ss:$0 sm:$0xff]  ;;  %v1300_v26 = vcombine.high %v641_v22, %v642_v24 }
  0x47   : > { %341 = vperm.xlu1 %1437, %v300_v3   ;;  %337 = vperm.xlu0 %1436, %v299_v2   ;;  %v1264_v55 = vld [vmem:[%s1839_s2] ss:$0 sm:$0xff]  ;;  %v1290_v2 = vcombine.high %v631_v60, %v632_v61  ;;  %v633_v3 = vld [vmem:[#allocation2 + $0x88] sm:$0xff]  ;;  %v807_v60 = vld [vmem:[#allocation2 + $0x90] sm:$0xff]  ;;  %p1480_p6 = pnand %p1479_p5, %p1473_p13 }
  0x48   : > { %1354 = vmatpush3.bf16.msra.mxu0 %v1441_v9  ;;  %552 = vmatpush1.bf16.msra.mxu1 %v1275_v25  ;;  %v1292_v6 = vcombine.high %v633_v3, %v634_v4  ;;  %v635_v7 = vld [vmem:[#allocation2 + $0xc8] sm:$0xff]  ;;  %v1291_v9 = vcombine.low %v633_v3, %v634_v4  ;;  %v463_v20 = vld [vmem:[#allocation2 + $0x180] sm:$0xff]  ;;  %v1299_v25 = vcombine.low %v641_v22, %v642_v24  ;;  %v808_v61 = vld [vmem:[#allocation2 + $0xb0] sm:$0xff] }
  0x49   : > { %725 = vmatprep.subr.bf16.mxu0 %v1288_v19  ;;  %553 = vmatprep.subr.bf16.mxu1 %v1278_v28  ;;  %v1294_v10 = vcombine.high %v635_v7, %v636_v8  ;;  %v1293_v15 = vcombine.low %v635_v7, %v636_v8  ;;  %v1297_v19 = vcombine.low %v639_v17, %v640_v12  ;;  %v464_v21 = vld [vmem:[#allocation2 + $0x1a0] sm:$0xff]  ;;  %v643_v30 = vld [vmem:[#allocation2 + $0x1c8] sm:$0xff]  ;;  %v983_v7 = vld [vmem:[#allocation2 + $0xd8] sm:$0xff] }
  0x4a   : > { %v1284_v23 = vcombine.high %v463_v20, %v464_v21  ;;  %v1283_v27 = vcombine.low %v463_v20, %v464_v21  ;;  %v465_v28 = vld [vmem:[#allocation2 + $0x1c0] sm:$0xff]  ;;  %v1308_v3 = vcombine.high %v807_v60, %v808_v61  ;;  %v984_v8 = vld [vmem:[#allocation2 + $0xf8] sm:$0xff]  ;;  %v813_v20 = vld [vmem:[#allocation2 + $0x150] sm:$0xff] }
  0x4b   : > { %v1326_v13 = vcombine.high %v983_v7, %v984_v8  ;;  %v814_v21 = vld [vmem:[#allocation2 + $0x170] sm:$0xff]  ;;  %v987_v22 = vld [vmem:[#allocation2 + $0x158] sm:$0xff] }
  0x4c   : > { %554 = vmatpush1.bf16.msra.mxu1 %v1277_v29  ;;  %v466_v29 = vld [vmem:[#allocation2 + $0x1e0] sm:$0xff] }
  0x4d   : > { %555 = vmatprep.subr.bf16.mxu1 %v1280_v32  ;;  %v1286_v31 = vcombine.high %v465_v28, %v466_v29  ;;  %v644_v32 = vld [vmem:[#allocation2 + $0x1e8] sm:$0xff]  ;;  %v1285_v35 = vcombine.low %v465_v28, %v466_v29  ;;  %v815_v28 = vld [vmem:[#allocation2 + $0x190] sm:$0xff] }
  0x4e   : > { %v1302_v34 = vcombine.high %v643_v30, %v644_v32  ;;  %v816_v29 = vld [vmem:[#allocation2 + $0x1b0] sm:$0xff] }
  0x50   : > { %556 = vmatpush1.bf16.msra.mxu1 %v1279_v33  ;;  %v1301_v33 = vcombine.low %v643_v30, %v644_v32  ;;  %v989_v30 = vld [vmem:[#allocation2 + $0x198] sm:$0xff]  ;;  %v1313_v32 = vcombine.low %v813_v20, %v814_v21 }
  0x51   : > { %557 = vmatprep.subr.bf16.mxu1 %v1282_v36  ;;  %v803_v36 = vld [vmem:[#allocation2 + $0x10] sm:$0xff] }
  0x54   : > { %558 = vmatpush1.bf16.msra.mxu1 %v1281_v37  ;;  %v804_v37 = vld [vmem:[#allocation2 + $0x30] sm:$0xff] }
  0x55   : > { %559 = vmatprep.subr.bf16.mxu1 %v1284_v23  ;;  %v988_v23 = vld [vmem:[#allocation2 + $0x178] sm:$0xff] }
  0x58   : > { %560 = vmatpush1.bf16.msra.mxu1 %v1283_v27  ;;  %v1330_v27 = vcombine.high %v987_v22, %v988_v23 }
  0x59   : > { %561 = vmatprep.subr.bf16.mxu1 %v1286_v31  ;;  %v990_v31 = vld [vmem:[#allocation2 + $0x1b8] sm:$0xff] }
  0x5c   : > { %562 = vmatpush1.bf16.msra.mxu1 %v1285_v35  ;;  %v1332_v35 = vcombine.high %v989_v30, %v990_v31 }
  0xbd   : > { %v321_v38 = vpop.permute.xlu1 %320  ;;  %v305_v39 = vpop.permute.xlu0 %304 }
  0xbe   : > { %v331_v44 = vmul.f32 %v1262_v40, %v321_v38  ;;  %v316_v45 = vmul.f32 %v1261_v41, %v305_v39  ;;  %v977_v38 = vld [vmem:[#allocation2 + $0x18] sm:$0xff]  ;;  %v1304_v39 = vcombine.high %v803_v36, %v804_v37 }
  0xc0   : > { %v333_v51 = vadd.f32 %v331_v44, %v316_v45  ;;  %899 = vmatprep.subr.bf16.mxu1 %v1304_v39  ;;  %v1265_v44 = vld [vmem:[%s1841_s4] ss:$0 sm:$0xff]  ;;  %v992_v39 = vld [vmem:[#allocation2 + $0x1f8] sm:$0xff] }
  0xc1   : > { %v325_v42 = vpop.permute.xlu1 %324  ;;  %v310_v43 = vpop.permute.xlu0 %309 }
  0xc2   : > { %v332_v46 = vmul.f32 %v1262_v40, %v325_v42  ;;  %v317_v47 = vmul.f32 %v1261_v41, %v310_v43  ;;  %v978_v40 = vld [vmem:[#allocation2 + $0x38] sm:$0xff]  ;;  %v1303_v41 = vcombine.low %v803_v36, %v804_v37  ;;  %v817_v36 = vld [vmem:[#allocation2 + $0x1d0] sm:$0xff] }
  0xc3   : > { %v1319_v42 = vcombine.low %v977_v38, %v978_v40  ;;  %v1320_v43 = vcombine.high %v977_v38, %v978_v40  ;;  %v818_v37 = vld [vmem:[#allocation2 + $0x1f0] sm:$0xff]  ;;  %v991_v38 = vld [vmem:[#allocation2 + $0x1d8] sm:$0xff]  ;;  %v1315_v40 = vcombine.low %v815_v28, %v816_v29 }
  0xc4   : > { %v334_v52 = vadd.f32 %v332_v46, %v317_v47 }
  0xc6   : > { %v342_v49 = vpop.permute.xlu1 %341  ;;  %v338_v50 = vpop.permute.xlu0 %337 }
  0xc7   : > { %v349_v53 = vmul.f32 %v1263_v48, %v342_v49  ;;  %v348_v54 = vmul.f32 %v1263_v48, %v338_v50 }
  0xc9   : > { %v351_v56 = vadd.f32 %v349_v53, %v334_v52  ;;  %v350_v57 = vadd.f32 %v348_v54, %v333_v51  ;;  %v805_v51 = vld [vmem:[#allocation2 + $0x50] sm:$0xff]  ;;  %v979_v53 = vld [vmem:[#allocation2 + $0x58] sm:$0xff] }
  0xca   : > { %v806_v52 = vld [vmem:[#allocation2 + $0x70] sm:$0xff]  ;;  %v980_v54 = vld [vmem:[#allocation2 + $0x78] sm:$0xff] }
  0xcb   : > { %v360_v58 = vadd.f32 %v1264_v55, %v351_v56  ;;  %v359_v59 = vadd.f32 %v1264_v55, %v350_v57 }
  0xcd   : > { %v362_v62 = vmax.f32 %v360_v58, 0.0  ;;  %v361_v63 = vmax.f32 %v359_v59, 0.0  ;;  %v1306_v58 = vcombine.high %v805_v51, %v806_v52  ;;  %v1322_v59 = vcombine.high %v979_v53, %v980_v54 }
  0xcf   : > { %v363_v0 = vpack.c.bf16 %v362_v62, %v361_v63  ;;  %v981_v62 = vld [vmem:[#allocation2 + $0x98] sm:$0xff] }
  0xd0   : > { %v982_v63 = vld [vmem:[#allocation2 + $0xb8] sm:$0xff] }
  0xd1   : > { %1356 = vmatmul.mubr.msk.bf16.vlgmr.msra.gmra.mrb[0].mxu0 %vm403_vm1, %v363_v0  ;;  %v1305_v0 = vcombine.low %v805_v51, %v806_v52  ;;  %v1324_v4 = vcombine.high %v981_v62, %v982_v63 }
  0xd2   : > { %726 = vmatpush1.bf16.msra.mxu0 %v1287_v18  ;;  %757 = vmatprep.mubr.bf16.mxu0 %v1558_v1  ;;  %v1298_v18 = vcombine.high %v639_v17, %v640_v12  ;;  %v985_v17 = vld [vmem:[#allocation2 + $0x118] sm:$0xff] }
  0xd3   : > { %727 = vmatprep.subr.bf16.mxu0 %v1290_v2  ;;  %v1321_v2 = vcombine.low %v979_v53, %v980_v54  ;;  %v986_v12 = vld [vmem:[#allocation2 + $0x138] sm:$0xff] }
  0xd6   : > { %728 = vmatpush1.bf16.msra.mxu0 %v1289_v5  ;;  %v809_v5 = vld [vmem:[#allocation2 + $0xd0] sm:$0xff] }
  0xd7   : > { %729 = vmatprep.subr.bf16.mxu0 %v1292_v6  ;;  %v810_v6 = vld [vmem:[#allocation2 + $0xf0] sm:$0xff] }
  0xd8   : > { %v1310_v11 = vcombine.high %v809_v5, %v810_v6 }
  0xda   : > { %730 = vmatpush1.bf16.msra.mxu0 %v1291_v9  ;;  %v1307_v9 = vcombine.low %v807_v60, %v808_v61 }
  0xdb   : > { %731 = vmatprep.subr.bf16.mxu0 %v1294_v10  ;;  %v1323_v10 = vcombine.low %v981_v62, %v982_v63 }
  0xde   : > { %732 = vmatpush1.bf16.msra.mxu0 %v1293_v15  ;;  %v811_v15 = vld [vmem:[#allocation2 + $0x110] sm:$0xff] }
  0xdf   : > { %733 = vmatprep.subr.bf16.mxu0 %v1296_v16  ;;  %v812_v16 = vld [vmem:[#allocation2 + $0x130] sm:$0xff] }
  0xe0   : > { %v1311_v24 = vcombine.low %v811_v15, %v812_v16 }
  0xe2   : > { %734 = vmatpush1.bf16.msra.mxu0 %v1295_v14  ;;  %v1309_v14 = vcombine.low %v809_v5, %v810_v6  ;;  %v611_v5 = vlaneseq }
  0xe3   : > { %735 = vmatprep.subr.bf16.mxu0 %v1298_v18  ;;  %v1325_v18 = vcombine.low %v983_v7, %v984_v8 }
  0xe4   : > { %vm1761_vm2 = vcmp.lt.s32.totalorder %v611_v5, 256 }
  0xe6   : > { %736 = vmatpush1.bf16.msra.mxu0 %v1297_v19  ;;  %v1312_v19 = vcombine.high %v811_v15, %v812_v16 }
  0xe7   : > { %737 = vmatprep.subr.bf16.mxu0 %v1300_v26  ;;  %v1314_v26 = vcombine.high %v813_v20, %v814_v21 }
  0xea   : > { %738 = vmatpush1.bf16.msra.mxu0 %v1299_v25  ;;  %v1327_v25 = vcombine.low %v985_v17, %v986_v12 }
  0xeb   : > { %739 = vmatprep.subr.bf16.mxu0 %v1302_v34  ;;  %v1316_v34 = vcombine.high %v815_v28, %v816_v29 }
  0xee   : > { %740 = vmatpush1.bf16.msra.mxu0 %v1301_v33  ;;  %v1329_v33 = vcombine.low %v987_v22, %v988_v23 }
  0xef   : > { %1073 = vmatprep.subr.bf16.mxu0 %v1320_v43  ;;  %v1334_v43 = vcombine.high %v991_v38, %v992_v39 }
 0x1a4   : > { %v441_v45 = vpop.f32.mrb[0].mxu0 }
 0x1a5   : > { %v442_v46 = vadd.f32 %v1265_v44, %v441_v45  ;;  %v1357_v47 = vpop.f32.mrb[1].mxu0  ;;  %v1333_v45 = vcombine.low %v991_v38, %v992_v39 }
 0x1a6   : > { %v444_v48 = vpop.f32.mrb[2].mxu0 }
 0x1a7   : > { %v445_v49 = vadd.f32 %v1265_v44, %v444_v48  ;;  %v1358_v50 = vpop.f32.mrb[3].mxu0  ;;  %v448_v55 = vmax.f32 %v442_v46, 0.0  ;;  %v1317_v44 = vcombine.low %v817_v36, %v818_v37  ;;  %v1562_v46 = vmov -inf  }
 0x1a8   : > { %298 = vst [vmem:[%s1750_s13] sm:$0xff] %v1562_v46 }
 0x1a9   : > { %v449_v56 = vmax.f32 %v445_v49, 0.0 }
 0x1ab   : > { %v1739_v57 = vpack.c.bf16 %v449_v56, %v448_v55 }
 0x1ad   : > { %580 = vmatmul.mubr.bf16.vlgmr.msra.gmra.mrb[0].mxu1 %v1739_v57  ;;  %758 = vmatmul.mubr.bf16.vlgmr.msra.gmra.mrb[4].mxu0 %v1739_v57 }
 0x1ae   : > { %900 = vmatpush1.bf16.msra.mxu1 %v1303_v41  ;;  %1074 = vmatpush1.bf16.msra.mxu0 %v1319_v42  ;;  %v1331_v41 = vcombine.low %v989_v30, %v990_v31  ;;  %v1318_v42 = vcombine.high %v817_v36, %v818_v37 }
 0x1af   : > { %901 = vmatprep.subr.bf16.mxu1 %v1306_v58  ;;  %1075 = vmatprep.subr.bf16.mxu0 %v1322_v59  ;;  %v590_v29 = vld [vmem:[%s1750_s13] sm:$0x3]  ;;  %v768_v30 = vld [vmem:[%s1750_s13 + $0x2] sm:$0x3] }
 0x1b0   : > { %931 = vmatprep.mubr.bf16.mxu1 %v1558_v1  ;;  %1105 = vmatprep.mubr.bf16.mxu0 %v1558_v1  ;;  %v1328_v1 = vcombine.high %v985_v17, %v986_v12  ;;  %v612_v17 = vshrl.u32 %v611_v5, 7 }
 0x1b2   : > { %902 = vmatpush1.bf16.msra.mxu1 %v1305_v0  ;;  %1076 = vmatpush1.bf16.msra.mxu0 %v1321_v2 }
 0x1b3   : > { %903 = vmatprep.subr.bf16.mxu1 %v1308_v3  ;;  %1077 = vmatprep.subr.bf16.mxu0 %v1324_v4  ;;  %v1563_v3 = vmov 1966171168  }
 0x1b4   : > { %v609_v4 = vunpack.c.l.s4 %v1563_v3 }
 0x1b6   : > { %904 = vmatpush1.bf16.msra.mxu1 %v1307_v9  ;;  %1078 = vmatpush1.bf16.msra.mxu0 %v1323_v10  ;;  %v610_v16 = vunpack.c.0.s8 %v609_v4 }
 0x1b7   : > { %905 = vmatprep.subr.bf16.mxu1 %v1310_v11  ;;  %1079 = vmatprep.subr.bf16.mxu0 %v1326_v13 }
 0x1b8   : > { %v1753_v23 = vsub.s32 %v610_v16, %v612_v17  ;;  %v1116_v16 = vld [vmem:[%s1750_s13 + $0x6] sm:$0x3] }
 0x1ba   : > { %906 = vmatpush1.bf16.msra.mxu1 %v1309_v14  ;;  %1080 = vmatpush1.bf16.msra.mxu0 %v1325_v18 }
 0x1bb   : > { %907 = vmatprep.subr.bf16.mxu1 %v1312_v19  ;;  %1081 = vmatprep.subr.bf16.mxu0 %v1328_v1 }
 0x1be   : > { %908 = vmatpush1.bf16.msra.mxu1 %v1311_v24  ;;  %1082 = vmatpush1.bf16.msra.mxu0 %v1327_v25 }
 0x1bf   : > { %909 = vmatprep.subr.bf16.mxu1 %v1314_v26  ;;  %1083 = vmatprep.subr.bf16.mxu0 %v1330_v27 }
 0x1c2   : > { %910 = vmatpush1.bf16.msra.mxu1 %v1313_v32  ;;  %1084 = vmatpush1.bf16.msra.mxu0 %v1329_v33 }
 0x1c3   : > { %911 = vmatprep.subr.bf16.mxu1 %v1316_v34  ;;  %1085 = vmatprep.subr.bf16.mxu0 %v1332_v35 }
 0x1c6   : > { %912 = vmatpush1.bf16.msra.mxu1 %v1315_v40  ;;  %1086 = vmatpush1.bf16.msra.mxu0 %v1331_v41 }
 0x1c7   : > { %913 = vmatprep.subr.bf16.mxu1 %v1318_v42  ;;  %1087 = vmatprep.subr.bf16.mxu0 %v1334_v43 }
 0x1ca   : > { %914 = vmatpush1.bf16.msra.mxu1 %v1317_v44  ;;  %1088 = vmatpush1.bf16.msra.mxu0 %v1333_v45 }
 0x1cd   : > { %932 = vmatmul.mubr.bf16.vlgmr.msra.gmra.mrb[4].mxu1 %v1739_v57  ;;  %1106 = vmatmul.mubr.bf16.vlgmr.msra.gmra.mrb[8].mxu0 %v1739_v57 }
 0x280   : > { %v581_v47 = vpop.f32.mrb[0].mxu1  ;;  %v759_v48 = vpop.f32.mrb[4].mxu0 }
 0x281   : > { %v583_v49 = vpop.f32.mrb[1].mxu1  ;;  %v761_v50 = vpop.f32.mrb[5].mxu0 }
 0x282   : > { %v585_v51 = vpop.f32.mrb[2].mxu1  ;;  %v763_v52 = vpop.f32.mrb[6].mxu0 }
 0x283   : > { %v591_v53 = vmax.f32 %v581_v47, %v585_v51  ;;  %v769_v54 = vmax.f32 %v759_v48, %v763_v52  ;;  %v587_v55 = vpop.f32.mrb[3].mxu1  ;;  %v765_v56 = vpop.f32.mrb[7].mxu0 }
 0x284   : > { %v598_v58 = vmax.f32 %v583_v49, %v587_v55  ;;  %v776_v57 = vmax.f32 %v761_v50, %v765_v56 }
 0x285   : > { %v592_v59 = vrot.slane %v591_v53, 4  ;;  %v770_v60 = vrot.slane %v769_v54, 4 }
 0x286   : > { %v599_v61 = vrot.slane %v598_v58, 4  ;;  %v777_v62 = vrot.slane %v776_v57, 4 }
 0x287   : > { %v593_v63 = vmax.f32 %v591_v53, %v592_v59  ;;  %v771_v0 = vmax.f32 %v769_v54, %v770_v60 }
 0x288   : > { %v600_v2 = vmax.f32 %v598_v58, %v599_v61  ;;  %v778_v6 = vmax.f32 %v776_v57, %v777_v62 }
 0x289   : > { %v594_v7 = vrot.slane %v593_v63, 2  ;;  %v772_v8 = vrot.slane %v771_v0, 2 }
 0x28a   : > { %v601_v9 = vrot.slane %v600_v2, 2  ;;  %v779_v10 = vrot.slane %v778_v6, 2 }
 0x28b   : > { %v595_v11 = vmax.f32 %v593_v63, %v594_v7  ;;  %v773_v13 = vmax.f32 %v771_v0, %v772_v8 }
 0x28c   : > { %v602_v15 = vmax.f32 %v600_v2, %v601_v9  ;;  %v780_v12 = vmax.f32 %v778_v6, %v779_v10 }
 0x28d   : > { %v596_v14 = vrot.slane %v595_v11, 1  ;;  %v774_v18 = vrot.slane %v773_v13, 1 }
 0x28e   : > { %v603_v19 = vrot.slane %v602_v15, 1  ;;  %v781_v1 = vrot.slane %v780_v12, 1 }
 0x28f   : > { %v597_v20 = vmax.f32 %v595_v11, %v596_v14  ;;  %v775_v21 = vmax.f32 %v773_v13, %v774_v18 }
 0x290   : > { %v604_v22 = vmax.f32 %v602_v15, %v603_v19  ;;  %v782_v24 = vmax.f32 %v780_v12, %v781_v1  ;;  %v942_v15 = vld [vmem:[%s1750_s13 + $0x4] sm:$0x3] }
 0x292   : > { %v607_v25 = vcombine.low %v597_v20, %v604_v22  ;;  %v785_v26 = vcombine.low %v775_v21, %v782_v24 }
 0x294   : > { %v614_v27 = vrot.slane %v607_v25, %v1753_v23  ;;  %v792_v28 = vrot.slane %v785_v26, %v1753_v23 }
 0x296   : > { %v621_v31 = vrot.slane %v614_v27, %v1753_v23  ;;  %v799_v32 = vrot.slane %v792_v28, %v1753_v23 }
 0x298   : > { %v623_v34 = vmax.f32 %v590_v29, %v621_v31  ;;  %v801_v35 = vmax.f32 %v768_v30, %v799_v32 }
 0x29a   : > { %628 = vst.msk [vmem:[%s1750_s13] sm:$0x3] %vm1761_vm2, %v623_v34  ;;  %802 = vst.msk [vmem:[%s1750_s13 + $0x2] sm:$0x3] %vm1761_vm2, %v801_v35 }
 0x2a0   : > { %v933_v36 = vpop.f32.mrb[4].mxu1  ;;  %v1107_v37 = vpop.f32.mrb[8].mxu0 }
 0x2a1   : > { %v935_v38 = vpop.f32.mrb[5].mxu1  ;;  %v1109_v39 = vpop.f32.mrb[9].mxu0 }
 0x2a2   : > { %v937_v40 = vpop.f32.mrb[6].mxu1  ;;  %v1111_v41 = vpop.f32.mrb[10].mxu0 }
 0x2a3   : > { %v943_v42 = vmax.f32 %v933_v36, %v937_v40  ;;  %v1117_v43 = vmax.f32 %v1107_v37, %v1111_v41  ;;  %v939_v44 = vpop.f32.mrb[7].mxu1  ;;  %v1113_v45 = vpop.f32.mrb[11].mxu0 }
 0x2a4   : > { %v950_v46 = vmax.f32 %v935_v38, %v939_v44  ;;  %v1124_v47 = vmax.f32 %v1109_v39, %v1113_v45 }
 0x2a5   : > { %v944_v48 = vrot.slane %v943_v42, 4  ;;  %v1118_v49 = vrot.slane %v1117_v43, 4 }
 0x2a6   : > { %v951_v50 = vrot.slane %v950_v46, 4  ;;  %v1125_v51 = vrot.slane %v1124_v47, 4 }
 0x2a7   : > { %v945_v52 = vmax.f32 %v943_v42, %v944_v48  ;;  %v1119_v53 = vmax.f32 %v1117_v43, %v1118_v49 }
 0x2a8   : > { %v952_v54 = vmax.f32 %v950_v46, %v951_v50  ;;  %v1126_v55 = vmax.f32 %v1124_v47, %v1125_v51 }
 0x2a9   : > { %v946_v56 = vrot.slane %v945_v52, 2  ;;  %v1120_v58 = vrot.slane %v1119_v53, 2 }
 0x2aa   : > { %v953_v57 = vrot.slane %v952_v54, 2  ;;  %v1127_v59 = vrot.slane %v1126_v55, 2 }
 0x2ab   : > { %v947_v60 = vmax.f32 %v945_v52, %v946_v56  ;;  %v1121_v61 = vmax.f32 %v1119_v53, %v1120_v58 }
 0x2ac   : > { %v954_v62 = vmax.f32 %v952_v54, %v953_v57  ;;  %v1128_v63 = vmax.f32 %v1126_v55, %v1127_v59 }
 0x2ad   : > { %v948_v0 = vrot.slane %v947_v60, 1  ;;  %v1122_v2 = vrot.slane %v1121_v61, 1 }
 0x2ae   : > { %v955_v3 = vrot.slane %v954_v62, 1  ;;  %v1129_v4 = vrot.slane %v1128_v63, 1 }
 0x2af   : > { %v949_v5 = vmax.f32 %v947_v60, %v948_v0  ;;  %v1123_v6 = vmax.f32 %v1121_v61, %v1122_v2 }
 0x2b0   : > { %v956_v7 = vmax.f32 %v954_v62, %v955_v3  ;;  %v1130_v8 = vmax.f32 %v1128_v63, %v1129_v4 }
 0x2b2   : > { %v959_v9 = vcombine.low %v949_v5, %v956_v7  ;;  %v1133_v10 = vcombine.low %v1123_v6, %v1130_v8 }
 0x2b4   : > { %v966_v11 = vrot.slane %v959_v9, %v1753_v23  ;;  %v1140_v13 = vrot.slane %v1133_v10, %v1753_v23 }
 0x2b6   : > { %v973_v17 = vrot.slane %v966_v11, %v1753_v23  ;;  %v1147_v12 = vrot.slane %v1140_v13, %v1753_v23 }
 0x2b8   : > { %v975_v14 = vmax.f32 %v942_v15, %v973_v17  ;;  %v1149_v18 = vmax.f32 %v1116_v16, %v1147_v12 }
 0x2ba   : > { %976 = vst.msk [vmem:[%s1750_s13 + $0x4] sm:$0x3] %vm1761_vm2, %v975_v14  ;;  %1150 = vst.msk [vmem:[%s1750_s13 + $0x6] sm:$0x3] %vm1761_vm2, %v1149_v18 }
 0x2bb   : > { %1483 = shalt.err (!%p1480_p6)
}
 0x2bc   : > { %s1484_s27 = scalar_lea.hbm %s1782_s11, 128  ;;  %s1488_s8 = scalar_lea.hbm %s1843_s6, 256 }
 0x2bd   : > { %p1485_p7 = scmp.ne.s32.totalorder %s1782_s11, %s1484_s27  ;;  %p1489_p0 = scmp.lt.u32.totalorder %s1782_s11, %s1843_s6 }
 0x2be   : > { %p1490_p2 = scmp.lt.u32.totalorder %s1488_s8, %s1484_s27  ;;  %p1492_p8 = scmp.lt.u32.totalorder %s1484_s27, %s1782_s11 }
 0x2bf   : > { %p1486_p9 = pnand %p1485_p7, %p1857_p10 }
 0x2c0   : > { %p1491_p4 = por %p1490_p2, %p1489_p0 }
 0x2c1   : > { %p1487_p12 = pneg %p1486_p9 }
 0x2c2   : > { %p1493_p11 = por %p1492_p8, %p1491_p4 }
 0x2c4   : > { %p1494_p13 = pnand %p1493_p11, %p1487_p12 }
 0x2c6   : > { %1497 = shalt.err (!%p1494_p13)
}
 0x2c7   : > { %1363 = dma.vmem_to_hbm [thread:$0]  (%p1857_p10), %s1784_s17, 128, %s1782_s11, %s1152_s24  }
 0x2c8 PF: > { %p1375_p1 = scmp.ge.s32.totalorder %s1552_s26, 2  ;;  %s1178_s15 = sand.u32 1, %s1532_s21  }
 0x2c9   : > { %p1858_p3 = scmp.ne.s32.totalorder %s1849_s9, 0  ;;  %s1179_s14 = scalar_lea.sflag [#allocation4], %s1178_s15 }
 0x2cb   : > { %p1370_p5 = pnand %p1375_p1, %p1858_p3 }
 0x2cd   : > { %1527 = dma.done.wait (!%p1370_p5), %s1179_s14, 128  }
 0x2ce   : > { %1529 = vsyncadd (!%p1370_p5), %s1179_s14, 4294967168  ;;  %s20_s26 = sadd.s32 1, %s1552_s26   ;;  %s1859_s21 = smov %s1536_s22 }
 0x2cf   : > { %p17_p6 = scmp.ge.s32.totalorder %s20_s26, 4   ;;  %s1860_s22 = smov %s1540_s23 }
 0x2d0   : > { %s1861_s23 = smov %s1653_s10  ;;  %s1862_s24 = smov %s1548_s25 }
 0x2d1   : > { %s1863_s25 = smov %s1865_s29  ;;  %19 = sbr.rel (!%p17_p6) target bundleno = 5 (0x5), region = 88 }
 0x2d8   :  { %1184 = vsyncpa [#allocation3], 1 }
 0x2d9   :  { %1186 = vsyncpa [#allocation3 + $0x1], 1 }
 0x2da   :  { %1187 = vsyncpa [#allocation4], 1 }
 0x2db   :  { %1189 = vsyncpa [#allocation4 + $0x1], 1 }

</bundles_post_ra>
